<compile_context>
chip_gen: v6e
topology: v6e:2x2x1
jax: 0.10.0
libtpu: 0.0.40
codegen_flags: <defaults>
</compile_context>

<pallas_src>
import math
import functools

import jax
import jax.numpy as jnp
from jax import lax
from jax.experimental import pallas as pl
from jax.experimental.pallas import tpu as pltpu

EPS = 1e-5


# ----------------------------- kernel helpers -----------------------------

def _layernorm(x, w, b):
    mu = jnp.mean(x, axis=-1, keepdims=True)
    xc = x - mu
    var = jnp.mean(xc * xc, axis=-1, keepdims=True)
    return xc * lax.rsqrt(var + EPS) * w + b


# --------------------------------- kernel ---------------------------------

def fused_forward_kernel(bb, T, H,
                         tokens_ref, pe_ref, in_w_ref, gsmall_ref,
                         wqkv_ref, wo_ref, w1_ref, w2_ref, lsmall_ref,
                         hid_w_ref, pred_w_ref, o_ref):
    """Full forward: embed -> L post-norm encoder layers -> hidden -> prediction."""
    N = bb * T
    D = in_w_ref.shape[1]
    F = w1_ref.shape[2]
    L = wqkv_ref.shape[0]
    dh = D // H
    s_pad = pred_w_ref.shape[1]
    bf16 = jnp.bfloat16

    # global small params (packed rows, lane-padded to P)
    gsm = gsmall_ref[...]                                      # (5, P) f32
    in_b, ln_w, ln_b = gsm[0:1, :D], gsm[1:2, :D], gsm[2:3, :D]
    hid_b, pred_b = gsm[3:4, :D], gsm[4:5, :s_pad]

    # ---- embed: input_mapping -> relu -> + positional encoding -> LayerNorm
    x = tokens_ref[...].astype(bf16)                           # (N, S+A)
    h = jnp.dot(x, in_w_ref[...], preferred_element_type=jnp.float32) + in_b
    h = jnp.maximum(h, 0.0)
    h = (h.reshape(bb, T, D) + pe_ref[...][None]).reshape(N, D)   # PE broadcast (hoisted)
    h = _layernorm(h, ln_w, ln_b)

    def _split_heads(qkv, base):
        # (N, 3D) columns [base : base+D] -> (H*bb, T, dh), head-major on leading axis
        parts = [qkv[:, base + hd * dh: base + (hd + 1) * dh].reshape(bb, T, dh)
                 for hd in range(H)]
        out = parts[0] if H == 1 else jnp.concatenate(parts, axis=0)
        return out.astype(bf16)

    def layer(l, h):
        # dynamic first-axis indexing of stacked per-layer weights
        wqkv = wqkv_ref[l]                                     # (D, 3D) bf16 (Q pre-scaled)
        wo = wo_ref[l]                                         # (D, D)  bf16
        w1 = w1_ref[l]                                         # (D, F)  bf16
        w2 = w2_ref[l]                                         # (F, D)  bf16
        ls = lsmall_ref[l]                                     # (8, P)  f32
        bqkv = ls[0:1, :3 * D]
        bo, ln1w, ln1b = ls[1:2, :D], ls[2:3, :D], ls[3:4, :D]
        b1 = ls[4:5, :F]
        b2, ln2w, ln2b = ls[5:6, :D], ls[6:7, :D], ls[7:8, :D]

        # ---- multi-head self-attention (batched over bb*H)
        qkv = jnp.dot(h.astype(bf16), wqkv,
                      preferred_element_type=jnp.float32) + bqkv      # (N, 3D)
        q = _split_heads(qkv, 0)                                      # (H*bb, T, dh)
        k = _split_heads(qkv, D)
        v = _split_heads(qkv, 2 * D)

        s = jnp.einsum('bqd,bkd->bqk', q, k,
                       preferred_element_type=jnp.float32)            # (H*bb, T, T)
        s = s - jnp.max(s, axis=-1, keepdims=True)
        p = jnp.exp(s)
        p = p * pl.reciprocal(jnp.sum(p, axis=-1, keepdims=True), approx=True)
        o = jnp.einsum('bqk,bkd->bqd', p.astype(bf16), v,
                       preferred_element_type=jnp.float32)            # (H*bb, T, dh)

        # re-assemble heads on the lane axis, then ONE output-projection matmul
        o_parts = [o[hd * bb:(hd + 1) * bb].reshape(N, dh) for hd in range(H)]
        o2d = o_parts[0] if H == 1 else jnp.concatenate(o_parts, axis=1)   # (N, D)
        attn = jnp.dot(o2d.astype(bf16), wo,
                       preferred_element_type=jnp.float32) + bo

        # residual + norm1
        h = _layernorm(h + attn, ln1w, ln1b)
        # FFN: linear2(relu(linear1(h)))
        ff = jnp.maximum(jnp.dot(h.astype(bf16), w1,
                                 preferred_element_type=jnp.float32) + b1, 0.0)
        ff = jnp.dot(ff.astype(bf16), w2,
                     preferred_element_type=jnp.float32) + b2
        # residual + norm2
        return _layernorm(h + ff, ln2w, ln2b)

    h = lax.fori_loop(0, L, layer, h)

    # ---- head: hidden_layer -> relu -> prediction_layer (lane-dense, padded)
    hh = jnp.maximum(jnp.dot(h.astype(bf16), hid_w_ref[...],
                             preferred_element_type=jnp.float32) + hid_b, 0.0)
    o_ref[...] = jnp.dot(hh.astype(bf16), pred_w_ref[...],
                         preferred_element_type=jnp.float32) + pred_b


# ------------------------------ params & glue ------------------------------

def _linear_init(key, fan_in, fan_out):
    """nn.Linear-style uniform(-1/sqrt(fan_in), 1/sqrt(fan_in)); W stored (in, out)."""
    k1, k2 = jax.random.split(key)
    lim = 1.0 / math.sqrt(fan_in)
    w = jax.random.uniform(k1, (fan_in, fan_out), jnp.float32, -lim, lim)
    b = jax.random.uniform(k2, (1, fan_out), jnp.float32, -lim, lim)
    return w, b


def _pad_row(v, width):
    return jnp.pad(v, ((0, 0), (0, width - v.shape[1])))


def make_params(key, state_dim, action_dim, D, F, n_layers, n_heads):
    """Builds packed, MXU-ready parameters.

    NOTE: initialization is nn.Linear-style; to compare weight-for-weight with a
    PyTorch checkpoint, re-pack (transpose) the torch tensors into these layouts.
    """
    s_pad = ((state_dim + 127) // 128) * 128
    P = ((max(3 * D, F, D, s_pad) + 127) // 128) * 128
    scale = 1.0 / math.sqrt(D // n_heads)
    bf16 = jnp.bfloat16

    ks = jax.random.split(key, 3 + n_layers)
    in_w, in_b = _linear_init(ks[0], state_dim + action_dim, D)
    ln_w = jnp.ones((1, D), jnp.float32)
    ln_b = jnp.zeros((1, D), jnp.float32)
    hid_w, hid_b = _linear_init(ks[1], D, D)
    pred_w, pred_b = _linear_init(ks[2], D, state_dim)
    pred_w = jnp.pad(pred_w, ((0, 0), (0, s_pad - state_dim)))     # lane-dense output
    pred_b = _pad_row(pred_b, s_pad)

    gsmall = jnp.concatenate(
        [_pad_row(in_b, P), _pad_row(ln_w, P), _pad_row(ln_b, P),
         _pad_row(hid_b, P), _pad_row(pred_b, P)], axis=0)          # (5, P)

    wqkv, wo, w1, w2, lsmall = [], [], [], [], []
    for l in range(n_layers):
        kl = jax.random.split(ks[3 + l], 6)
        wq, bq = _linear_init(kl[0], D, D)
        wk, bk = _linear_init(kl[1], D, D)
        wv, bv = _linear_init(kl[2], D, D)
        # fold the 1/sqrt(dh) attention scale into the Q projection (zero runtime cost)
        wq = wq * scale
        bq = bq * scale
        wqkv.append(jnp.concatenate([wq, wk, wv], axis=1))          # (D, 3D)
        bqkv = jnp.concatenate([bq, bk, bv], axis=1)                # (1, 3D)
        wo_l, bo_l = _linear_init(kl[3], D, D)
        w1_l, b1_l = _linear_init(kl[4], D, F)
        w2_l, b2_l = _linear_init(kl[5], F, D)
        wo.append(wo_l); w1.append(w1_l); w2.append(w2_l)
        ones = jnp.ones((1, D), jnp.float32)
        zeros = jnp.zeros((1, D), jnp.float32)
        # per-layer small params packed as 8 lane-padded rows:
        # [bqkv, bo, ln1w, ln1b, b1, b2, ln2w, ln2b]
        lsmall.append(jnp.concatenate(
            [_pad_row(bqkv, P), _pad_row(bo_l, P), _pad_row(ones, P), _pad_row(zeros, P),
             _pad_row(b1_l, P), _pad_row(b2_l, P), _pad_row(ones, P), _pad_row(zeros, P)],
            axis=0))                                                # (8, P)

    return dict(
        in_w=in_w.astype(bf16),
        gsmall=gsmall,                                  # f32
        wqkv=jnp.stack(wqkv).astype(bf16),              # (L, D, 3D)
        wo=jnp.stack(wo).astype(bf16),                  # (L, D, D)
        w1=jnp.stack(w1).astype(bf16),                  # (L, D, F)
        w2=jnp.stack(w2).astype(bf16),                  # (L, F, D)
        lsmall=jnp.stack(lsmall),                       # (L, 8, P) f32
        hid_w=hid_w.astype(bf16),                       # (D, D)
        pred_w=pred_w.astype(bf16),                     # (D, s_pad)
    )


def positional_encoding(T, D):
    pos = jnp.arange(T, dtype=jnp.float32)[:, None]
    div = jnp.exp(jnp.arange(0, D, 2, dtype=jnp.float32) * (-math.log(10000.0) / D))
    pe = jnp.zeros((T, D), jnp.float32)
    pe = pe.at[:, 0::2].set(jnp.sin(pos * div))
    pe = pe.at[:, 1::2].set(jnp.cos(pos * div))
    return pe


def _pick_bb(B, T, row_cap=2048):
    """Batch-block size: big blocks (amortize per-step overhead) but >=2 grid
    steps when possible so v7x can shard across its 2 TensorCores."""
    cands = [d for d in range(1, B + 1)
             if B % d == 0 and d * T <= row_cap and (d * T) % 8 == 0]
    if not cands:
        return B                       # single full-array block (always legal)
    multi = [d for d in cands if B // d >= 2]
    return max(multi) if multi else max(cands)


def reconstruction_forward(params, x, *, state_dim, action_dim, H):
    B = x.shape[0]
    D = params['in_w'].shape[1]
    s_pad = params['pred_w'].shape[1]

    state = x[:, :state_dim].reshape(B, 1, state_dim)
    action = x[:, state_dim:].reshape(B, -1, action_dim)
    T = action.shape[1]
    tokens = jnp.concatenate(
        [jnp.broadcast_to(state, (B, T, state_dim)), action], axis=2)   # (B,T,S+A)
    tokens2d = tokens.reshape(B * T, state_dim + action_dim)

    pe = positional_encoding(T, D)                                      # (T, D)

    bb = _pick_bb(B, T)
    grid = (B // bb,)

    weights = (params['in_w'], params['gsmall'],
               params['wqkv'], params['wo'], params['w1'], params['w2'],
               params['lsmall'], params['hid_w'], params['pred_w'])

    def _resident(a):
        # full array, same block every grid step (stays VMEM-resident, no re-DMA)
        return pl.BlockSpec(a.shape, lambda i, _nd=a.ndim: (0,) * _nd)

    # explicit scoped-VMEM request (v5e default is only 16 MiB)
    resident_bytes = sum(int(w.size) * w.dtype.itemsize for w in weights)
    resident_bytes += int(pe.size) * 4
    block_bytes = bb * T * (state_dim + action_dim + s_pad) * 4
    vmem_limit = int(min(64 << 20, 2 * (resident_bytes + block_bytes) + (16 << 20)))

    kern = functools.partial(fused_forward_kernel, bb, T, H)
    out = pl.pallas_call(
        kern,
        out_shape=jax.ShapeDtypeStruct((B * T, s_pad), jnp.float32),
        grid=grid,
        in_specs=[pl.BlockSpec((bb * T, state_dim + action_dim), lambda i: (i, 0)),
                  _resident(pe)] + [_resident(w) for w in weights],
        out_specs=pl.BlockSpec((bb * T, s_pad), lambda i: (i, 0)),
        compiler_params=pltpu.CompilerParams(
            dimension_semantics=("parallel",),
            vmem_limit_bytes=vmem_limit),
    )(tokens2d, pe, *weights)

    return out[:, :state_dim].reshape(B, T, state_dim)


# ----------------------------------- main -----------------------------------

if __name__ == "__main__":
    # small, forward-consistent shapes
    B = 2            # batch
    STATE_DIM = 3    # env.state_space.shape[0]
    ACTION_DIM = 1   # env.action_space.shape[0]
    T = 8            # number of delayed actions (sequence length)
    D = 32           # encoder_dim
    H = 4            # encoder_heads
    F = 64           # encoder_ff_hid
    L = 2            # encoder_layers

    key = jax.random.PRNGKey(0)
    kx, kp = jax.random.split(key)
    x = jax.random.normal(kx, (B, STATE_DIM + T * ACTION_DIM), jnp.float32)
    params = make_params(kp, STATE_DIM, ACTION_DIM, D, F, L, H)

    fwd = jax.jit(functools.partial(
        reconstruction_forward, state_dim=STATE_DIM, action_dim=ACTION_DIM, H=H))
    pred = jax.block_until_ready(fwd(params, x))

    assert pred.shape == (B, T, STATE_DIM), pred.shape
    assert bool(jnp.all(jnp.isfinite(pred))), "non-finite output"
    print("KERNEL_OK")
</pallas_src>

<mosaic_0001>
module attributes {stable_mosaic.version = 11 : i64} {
  func.func @fused_forward_kernel(%arg0: i32, %arg1: memref<8x4xf32, #tpu.memory_space<vmem>>, %arg2: memref<8x32xf32, #tpu.memory_space<vmem>>, %arg3: memref<4x32xbf16, #tpu.memory_space<vmem>>, %arg4: memref<5x128xf32, #tpu.memory_space<vmem>>, %arg5: memref<2x32x96xbf16, #tpu.memory_space<vmem>>, %arg6: memref<2x32x32xbf16, #tpu.memory_space<vmem>>, %arg7: memref<2x32x64xbf16, #tpu.memory_space<vmem>>, %arg8: memref<2x64x32xbf16, #tpu.memory_space<vmem>>, %arg9: memref<2x8x128xf32, #tpu.memory_space<vmem>>, %arg10: memref<32x32xbf16, #tpu.memory_space<vmem>>, %arg11: memref<32x128xbf16, #tpu.memory_space<vmem>>, %arg12: memref<8x128xf32, #tpu.memory_space<vmem>>) attributes {dimension_semantics = [#tpu.dimension_semantics<parallel>], iteration_bounds = array<i64: 2>, scalar_prefetch = 0 : i64, scratch_operands = 0 : i64, tpu.core_type = #tpu.core_type<tc>, window_params = [{transform_indices = @transform_0, window_bounds = array<i64: 8, 4>}, {pipeline_mode = #tpu.pipeline_mode<synchronous>, transform_indices = @transform_1, window_bounds = array<i64: 8, 32>}, {pipeline_mode = #tpu.pipeline_mode<synchronous>, transform_indices = @transform_2, window_bounds = array<i64: 4, 32>}, {pipeline_mode = #tpu.pipeline_mode<synchronous>, transform_indices = @transform_3, window_bounds = array<i64: 5, 128>}, {pipeline_mode = #tpu.pipeline_mode<synchronous>, transform_indices = @transform_4, window_bounds = array<i64: 2, 32, 96>}, {pipeline_mode = #tpu.pipeline_mode<synchronous>, transform_indices = @transform_5, window_bounds = array<i64: 2, 32, 32>}, {pipeline_mode = #tpu.pipeline_mode<synchronous>, transform_indices = @transform_6, window_bounds = array<i64: 2, 32, 64>}, {pipeline_mode = #tpu.pipeline_mode<synchronous>, transform_indices = @transform_7, window_bounds = array<i64: 2, 64, 32>}, {pipeline_mode = #tpu.pipeline_mode<synchronous>, transform_indices = @transform_8, window_bounds = array<i64: 2, 8, 128>}, {pipeline_mode = #tpu.pipeline_mode<synchronous>, transform_indices = @transform_9, window_bounds = array<i64: 32, 32>}, {pipeline_mode = #tpu.pipeline_mode<synchronous>, transform_indices = @transform_10, window_bounds = array<i64: 32, 128>}, {transform_indices = @transform_11, window_bounds = array<i64: 8, 128>}]} {
    %c0 = arith.constant 0 : index
    %c0_0 = arith.constant 0 : index
    %0 = vector.load %arg4[%c0, %c0_0] : memref<5x128xf32, #tpu.memory_space<vmem>>, vector<5x128xf32>
    %1 = vector.extract_strided_slice %0 {offsets = [0, 0], sizes = [1, 32], strides = [1, 1]} : vector<5x128xf32> to vector<1x32xf32>
    %2 = vector.extract_strided_slice %0 {offsets = [1, 0], sizes = [1, 32], strides = [1, 1]} : vector<5x128xf32> to vector<1x32xf32>
    %3 = vector.extract_strided_slice %0 {offsets = [2, 0], sizes = [1, 32], strides = [1, 1]} : vector<5x128xf32> to vector<1x32xf32>
    %4 = vector.extract_strided_slice %0 {offsets = [3, 0], sizes = [1, 32], strides = [1, 1]} : vector<5x128xf32> to vector<1x32xf32>
    %5 = vector.extract_strided_slice %0 {offsets = [4, 0], sizes = [1, 128], strides = [1, 1]} : vector<5x128xf32> to vector<1x128xf32>
    %c0_1 = arith.constant 0 : index
    %c0_2 = arith.constant 0 : index
    %6 = vector.load %arg1[%c0_1, %c0_2] : memref<8x4xf32, #tpu.memory_space<vmem>>, vector<8x4xf32>
    %7 = arith.truncf %6 : vector<8x4xf32> to vector<8x4xbf16>
    %c0_3 = arith.constant 0 : index
    %c0_4 = arith.constant 0 : index
    %8 = vector.load %arg3[%c0_3, %c0_4] : memref<4x32xbf16, #tpu.memory_space<vmem>>, vector<4x32xbf16>
    %cst = arith.constant dense<0.000000e+00> : vector<8x32xf32>
    %9 = tpu.matmul %7, %8, %cst {dimension_numbers = #tpu.dot_dimension_numbers<[1], [0], [0], [1], [0, 0, 1, 1], [], []>} : vector<8x4xbf16>, vector<4x32xbf16>, vector<8x32xf32> -> vector<8x32xf32>
    %10 = vector.broadcast %1 : vector<1x32xf32> to vector<8x32xf32>
    %11 = arith.addf %9, %10 : vector<8x32xf32>
    %cst_5 = arith.constant 0.000000e+00 : f32
    %12 = vector.broadcast %cst_5 : f32 to vector<8x32xf32>
    %13 = arith.maximumf %11, %12 : vector<8x32xf32>
    %14 = vector.shape_cast %13 : vector<8x32xf32> to vector<1x8x32xf32>
    %c0_6 = arith.constant 0 : index
    %c0_7 = arith.constant 0 : index
    %15 = vector.load %arg2[%c0_6, %c0_7] : memref<8x32xf32, #tpu.memory_space<vmem>>, vector<8x32xf32>
    %16 = vector.shape_cast %15 : vector<8x32xf32> to vector<1x8x32xf32>
    %17 = arith.addf %14, %16 : vector<1x8x32xf32>
    %18 = vector.shape_cast %17 : vector<1x8x32xf32> to vector<8x32xf32>
    %cst_8 = arith.constant dense<0.000000e+00> : vector<8xf32>
    %19 = vector.multi_reduction <add>, %18, %cst_8 [1] : vector<8x32xf32> to vector<8xf32>
    %20 = vector.shape_cast %19 : vector<8xf32> to vector<8x1xf32>
    %cst_9 = arith.constant 3.200000e+01 : f32
    %21 = vector.broadcast %cst_9 : f32 to vector<8x1xf32>
    %22 = arith.divf %20, %21 : vector<8x1xf32>
    %23 = vector.broadcast %22 : vector<8x1xf32> to vector<8x32xf32>
    %24 = arith.subf %18, %23 : vector<8x32xf32>
    %25 = arith.mulf %24, %24 : vector<8x32xf32>
    %cst_10 = arith.constant dense<0.000000e+00> : vector<8xf32>
    %26 = vector.multi_reduction <add>, %25, %cst_10 [1] : vector<8x32xf32> to vector<8xf32>
    %27 = vector.shape_cast %26 : vector<8xf32> to vector<8x1xf32>
    %cst_11 = arith.constant 3.200000e+01 : f32
    %28 = vector.broadcast %cst_11 : f32 to vector<8x1xf32>
    %29 = arith.divf %27, %28 : vector<8x1xf32>
    %cst_12 = arith.constant 9.99999974E-6 : f32
    %30 = vector.broadcast %cst_12 : f32 to vector<8x1xf32>
    %31 = arith.addf %29, %30 : vector<8x1xf32>
    %32 = math.rsqrt %31 : vector<8x1xf32>
    %33 = vector.broadcast %32 : vector<8x1xf32> to vector<8x32xf32>
    %34 = arith.mulf %24, %33 : vector<8x32xf32>
    %35 = vector.broadcast %2 : vector<1x32xf32> to vector<8x32xf32>
    %36 = arith.mulf %34, %35 : vector<8x32xf32>
    %37 = vector.broadcast %3 : vector<1x32xf32> to vector<8x32xf32>
    %38 = arith.addf %36, %37 : vector<8x32xf32>
    %c0_i32 = arith.constant 0 : i32
    %c2_i32 = arith.constant 2 : i32
    %39 = arith.addi %c0_i32, %c2_i32 : i32
    %c1_i32 = arith.constant 1 : i32
    %40 = scf.for %arg13 = %c0_i32 to %39 step %c1_i32 iter_args(%arg14 = %38) -> (vector<8x32xf32>)  : i32 {
      %54 = arith.index_cast %arg13 : i32 to index
      %c0_23 = arith.constant 0 : index
      %c0_24 = arith.constant 0 : index
      %55 = vector.load %arg5[%54, %c0_23, %c0_24] : memref<2x32x96xbf16, #tpu.memory_space<vmem>>, vector<1x32x96xbf16>
      %56 = vector.shape_cast %55 : vector<1x32x96xbf16> to vector<32x96xbf16>
      %57 = arith.index_cast %arg13 : i32 to index
      %c0_25 = arith.constant 0 : index
      %c0_26 = arith.constant 0 : index
      %58 = vector.load %arg6[%57, %c0_25, %c0_26] : memref<2x32x32xbf16, #tpu.memory_space<vmem>>, vector<1x32x32xbf16>
      %59 = vector.shape_cast %58 : vector<1x32x32xbf16> to vector<32x32xbf16>
      %60 = arith.index_cast %arg13 : i32 to index
      %c0_27 = arith.constant 0 : index
      %c0_28 = arith.constant 0 : index
      %61 = vector.load %arg7[%60, %c0_27, %c0_28] : memref<2x32x64xbf16, #tpu.memory_space<vmem>>, vector<1x32x64xbf16>
      %62 = vector.shape_cast %61 : vector<1x32x64xbf16> to vector<32x64xbf16>
      %63 = arith.index_cast %arg13 : i32 to index
      %c0_29 = arith.constant 0 : index
      %c0_30 = arith.constant 0 : index
      %64 = vector.load %arg8[%63, %c0_29, %c0_30] : memref<2x64x32xbf16, #tpu.memory_space<vmem>>, vector<1x64x32xbf16>
      %65 = vector.shape_cast %64 : vector<1x64x32xbf16> to vector<64x32xbf16>
      %66 = arith.index_cast %arg13 : i32 to index
      %c0_31 = arith.constant 0 : index
      %c0_32 = arith.constant 0 : index
      %67 = vector.load %arg9[%66, %c0_31, %c0_32] : memref<2x8x128xf32, #tpu.memory_space<vmem>>, vector<1x8x128xf32>
      %68 = vector.shape_cast %67 : vector<1x8x128xf32> to vector<8x128xf32>
      %69 = vector.extract_strided_slice %68 {offsets = [0, 0], sizes = [1, 96], strides = [1, 1]} : vector<8x128xf32> to vector<1x96xf32>
      %70 = vector.extract_strided_slice %68 {offsets = [1, 0], sizes = [1, 32], strides = [1, 1]} : vector<8x128xf32> to vector<1x32xf32>
      %71 = vector.extract_strided_slice %68 {offsets = [2, 0], sizes = [1, 32], strides = [1, 1]} : vector<8x128xf32> to vector<1x32xf32>
      %72 = vector.extract_strided_slice %68 {offsets = [3, 0], sizes = [1, 32], strides = [1, 1]} : vector<8x128xf32> to vector<1x32xf32>
      %73 = vector.extract_strided_slice %68 {offsets = [4, 0], sizes = [1, 64], strides = [1, 1]} : vector<8x128xf32> to vector<1x64xf32>
      %74 = vector.extract_strided_slice %68 {offsets = [5, 0], sizes = [1, 32], strides = [1, 1]} : vector<8x128xf32> to vector<1x32xf32>
      %75 = vector.extract_strided_slice %68 {offsets = [6, 0], sizes = [1, 32], strides = [1, 1]} : vector<8x128xf32> to vector<1x32xf32>
      %76 = vector.extract_strided_slice %68 {offsets = [7, 0], sizes = [1, 32], strides = [1, 1]} : vector<8x128xf32> to vector<1x32xf32>
      %77 = arith.truncf %arg14 : vector<8x32xf32> to vector<8x32xbf16>
      %cst_33 = arith.constant dense<0.000000e+00> : vector<8x96xf32>
      %78 = tpu.matmul %77, %56, %cst_33 {dimension_numbers = #tpu.dot_dimension_numbers<[1], [0], [0], [1], [0, 0, 1, 1], [], []>} : vector<8x32xbf16>, vector<32x96xbf16>, vector<8x96xf32> -> vector<8x96xf32>
      %79 = vector.broadcast %69 : vector<1x96xf32> to vector<8x96xf32>
      %80 = arith.addf %78, %79 : vector<8x96xf32>
      %81 = vector.extract_strided_slice %80 {offsets = [0, 0], sizes = [8, 8], strides = [1, 1]} : vector<8x96xf32> to vector<8x8xf32>
      %82 = vector.shape_cast %81 : vector<8x8xf32> to vector<1x8x8xf32>
      %83 = vector.extract_strided_slice %80 {offsets = [0, 8], sizes = [8, 8], strides = [1, 1]} : vector<8x96xf32> to vector<8x8xf32>
      %84 = vector.shape_cast %83 : vector<8x8xf32> to vector<1x8x8xf32>
      %85 = vector.extract_strided_slice %80 {offsets = [0, 16], sizes = [8, 8], strides = [1, 1]} : vector<8x96xf32> to vector<8x8xf32>
      %86 = vector.shape_cast %85 : vector<8x8xf32> to vector<1x8x8xf32>
      %87 = vector.extract_strided_slice %80 {offsets = [0, 24], sizes = [8, 8], strides = [1, 1]} : vector<8x96xf32> to vector<8x8xf32>
      %88 = vector.shape_cast %87 : vector<8x8xf32> to vector<1x8x8xf32>
      %89 = tpu.concatenate %82, %84, %86, %88 in 0 : vector<1x8x8xf32>, vector<1x8x8xf32>, vector<1x8x8xf32>, vector<1x8x8xf32> -> vector<4x8x8xf32>
      %90 = arith.truncf %89 : vector<4x8x8xf32> to vector<4x8x8xbf16>
      %91 = vector.extract_strided_slice %80 {offsets = [0, 32], sizes = [8, 8], strides = [1, 1]} : vector<8x96xf32> to vector<8x8xf32>
      %92 = vector.shape_cast %91 : vector<8x8xf32> to vector<1x8x8xf32>
      %93 = vector.extract_strided_slice %80 {offsets = [0, 40], sizes = [8, 8], strides = [1, 1]} : vector<8x96xf32> to vector<8x8xf32>
      %94 = vector.shape_cast %93 : vector<8x8xf32> to vector<1x8x8xf32>
      %95 = vector.extract_strided_slice %80 {offsets = [0, 48], sizes = [8, 8], strides = [1, 1]} : vector<8x96xf32> to vector<8x8xf32>
      %96 = vector.shape_cast %95 : vector<8x8xf32> to vector<1x8x8xf32>
      %97 = vector.extract_strided_slice %80 {offsets = [0, 56], sizes = [8, 8], strides = [1, 1]} : vector<8x96xf32> to vector<8x8xf32>
      %98 = vector.shape_cast %97 : vector<8x8xf32> to vector<1x8x8xf32>
      %99 = tpu.concatenate %92, %94, %96, %98 in 0 : vector<1x8x8xf32>, vector<1x8x8xf32>, vector<1x8x8xf32>, vector<1x8x8xf32> -> vector<4x8x8xf32>
      %100 = arith.truncf %99 : vector<4x8x8xf32> to vector<4x8x8xbf16>
      %101 = vector.extract_strided_slice %80 {offsets = [0, 64], sizes = [8, 8], strides = [1, 1]} : vector<8x96xf32> to vector<8x8xf32>
      %102 = vector.shape_cast %101 : vector<8x8xf32> to vector<1x8x8xf32>
      %103 = vector.extract_strided_slice %80 {offsets = [0, 72], sizes = [8, 8], strides = [1, 1]} : vector<8x96xf32> to vector<8x8xf32>
      %104 = vector.shape_cast %103 : vector<8x8xf32> to vector<1x8x8xf32>
      %105 = vector.extract_strided_slice %80 {offsets = [0, 80], sizes = [8, 8], strides = [1, 1]} : vector<8x96xf32> to vector<8x8xf32>
      %106 = vector.shape_cast %105 : vector<8x8xf32> to vector<1x8x8xf32>
      %107 = vector.extract_strided_slice %80 {offsets = [0, 88], sizes = [8, 8], strides = [1, 1]} : vector<8x96xf32> to vector<8x8xf32>
      %108 = vector.shape_cast %107 : vector<8x8xf32> to vector<1x8x8xf32>
      %109 = tpu.concatenate %102, %104, %106, %108 in 0 : vector<1x8x8xf32>, vector<1x8x8xf32>, vector<1x8x8xf32>, vector<1x8x8xf32> -> vector<4x8x8xf32>
      %110 = arith.truncf %109 : vector<4x8x8xf32> to vector<4x8x8xbf16>
      "tpu.trace_start"() <{level = 10 : i32, message = "bqd,bkd->bqk"}> : () -> ()
      %cst_34 = arith.constant dense<0.000000e+00> : vector<4x8x8xf32>
      %111 = tpu.matmul %90, %100, %cst_34 {dimension_numbers = #tpu.dot_dimension_numbers<[2], [2], [1], [1], [0, 0, 0, 1, 1, 1], [0], [0]>} : vector<4x8x8xbf16>, vector<4x8x8xbf16>, vector<4x8x8xf32> -> vector<4x8x8xf32>
      "tpu.trace_stop"() : () -> ()
      %cst_35 = arith.constant dense<0xFF800000> : vector<4x8xf32>
      %112 = vector.multi_reduction <maximumf>, %111, %cst_35 [2] : vector<4x8x8xf32> to vector<4x8xf32>
      %113 = vector.shape_cast %112 : vector<4x8xf32> to vector<4x8x1xf32>
      %114 = vector.broadcast %113 : vector<4x8x1xf32> to vector<4x8x8xf32>
      %115 = arith.subf %111, %114 : vector<4x8x8xf32>
      %116 = math.exp %115 : vector<4x8x8xf32>
      %cst_36 = arith.constant dense<0.000000e+00> : vector<4x8xf32>
      %117 = vector.multi_reduction <add>, %116, %cst_36 [2] : vector<4x8x8xf32> to vector<4x8xf32>
      %118 = vector.shape_cast %117 : vector<4x8xf32> to vector<4x8x1xf32>
      %119 = tpu.reciprocal %118 {approx = true} : vector<4x8x1xf32> -> vector<4x8x1xf32>
      %120 = vector.broadcast %119 : vector<4x8x1xf32> to vector<4x8x8xf32>
      %121 = arith.mulf %116, %120 : vector<4x8x8xf32>
      %122 = arith.truncf %121 : vector<4x8x8xf32> to vector<4x8x8xbf16>
      "tpu.trace_start"() <{level = 10 : i32, message = "bqk,bkd->bqd"}> : () -> ()
      %cst_37 = arith.constant dense<0.000000e+00> : vector<4x8x8xf32>
      %123 = tpu.matmul %122, %110, %cst_37 {dimension_numbers = #tpu.dot_dimension_numbers<[2], [1], [1], [2], [0, 0, 0, 1, 1, 2], [0], [0]>} : vector<4x8x8xbf16>, vector<4x8x8xbf16>, vector<4x8x8xf32> -> vector<4x8x8xf32>
      "tpu.trace_stop"() : () -> ()
      %124 = vector.extract_strided_slice %123 {offsets = [0, 0, 0], sizes = [1, 8, 8], strides = [1, 1, 1]} : vector<4x8x8xf32> to vector<1x8x8xf32>
      %125 = vector.shape_cast %124 : vector<1x8x8xf32> to vector<8x8xf32>
      %126 = vector.extract_strided_slice %123 {offsets = [1, 0, 0], sizes = [1, 8, 8], strides = [1, 1, 1]} : vector<4x8x8xf32> to vector<1x8x8xf32>
      %127 = vector.shape_cast %126 : vector<1x8x8xf32> to vector<8x8xf32>
      %128 = vector.extract_strided_slice %123 {offsets = [2, 0, 0], sizes = [1, 8, 8], strides = [1, 1, 1]} : vector<4x8x8xf32> to vector<1x8x8xf32>
      %129 = vector.shape_cast %128 : vector<1x8x8xf32> to vector<8x8xf32>
      %130 = vector.extract_strided_slice %123 {offsets = [3, 0, 0], sizes = [1, 8, 8], strides = [1, 1, 1]} : vector<4x8x8xf32> to vector<1x8x8xf32>
      %131 = vector.shape_cast %130 : vector<1x8x8xf32> to vector<8x8xf32>
      %132 = tpu.concatenate %125, %127, %129, %131 in 1 : vector<8x8xf32>, vector<8x8xf32>, vector<8x8xf32>, vector<8x8xf32> -> vector<8x32xf32>
      %133 = arith.truncf %132 : vector<8x32xf32> to vector<8x32xbf16>
      %cst_38 = arith.constant dense<0.000000e+00> : vector<8x32xf32>
      %134 = tpu.matmul %133, %59, %cst_38 {dimension_numbers = #tpu.dot_dimension_numbers<[1], [0], [0], [1], [0, 0, 1, 1], [], []>} : vector<8x32xbf16>, vector<32x32xbf16>, vector<8x32xf32> -> vector<8x32xf32>
      %135 = vector.broadcast %70 : vector<1x32xf32> to vector<8x32xf32>
      %136 = arith.addf %134, %135 : vector<8x32xf32>
      %137 = arith.addf %arg14, %136 : vector<8x32xf32>
      %cst_39 = arith.constant dense<0.000000e+00> : vector<8xf32>
      %138 = vector.multi_reduction <add>, %137, %cst_39 [1] : vector<8x32xf32> to vector<8xf32>
      %139 = vector.shape_cast %138 : vector<8xf32> to vector<8x1xf32>
      %cst_40 = arith.constant 3.200000e+01 : f32
      %140 = vector.broadcast %cst_40 : f32 to vector<8x1xf32>
      %141 = arith.divf %139, %140 : vector<8x1xf32>
      %142 = vector.broadcast %141 : vector<8x1xf32> to vector<8x32xf32>
      %143 = arith.subf %137, %142 : vector<8x32xf32>
      %144 = arith.mulf %143, %143 : vector<8x32xf32>
      %cst_41 = arith.constant dense<0.000000e+00> : vector<8xf32>
      %145 = vector.multi_reduction <add>, %144, %cst_41 [1] : vector<8x32xf32> to vector<8xf32>
      %146 = vector.shape_cast %145 : vector<8xf32> to vector<8x1xf32>
      %cst_42 = arith.constant 3.200000e+01 : f32
      %147 = vector.broadcast %cst_42 : f32 to vector<8x1xf32>
      %148 = arith.divf %146, %147 : vector<8x1xf32>
      %cst_43 = arith.constant 9.99999974E-6 : f32
      %149 = vector.broadcast %cst_43 : f32 to vector<8x1xf32>
      %150 = arith.addf %148, %149 : vector<8x1xf32>
      %151 = math.rsqrt %150 : vector<8x1xf32>
      %152 = vector.broadcast %151 : vector<8x1xf32> to vector<8x32xf32>
      %153 = arith.mulf %143, %152 : vector<8x32xf32>
      %154 = vector.broadcast %71 : vector<1x32xf32> to vector<8x32xf32>
      %155 = arith.mulf %153, %154 : vector<8x32xf32>
      %156 = vector.broadcast %72 : vector<1x32xf32> to vector<8x32xf32>
      %157 = arith.addf %155, %156 : vector<8x32xf32>
      %158 = arith.truncf %157 : vector<8x32xf32> to vector<8x32xbf16>
      %cst_44 = arith.constant dense<0.000000e+00> : vector<8x64xf32>
      %159 = tpu.matmul %158, %62, %cst_44 {dimension_numbers = #tpu.dot_dimension_numbers<[1], [0], [0], [1], [0, 0, 1, 1], [], []>} : vector<8x32xbf16>, vector<32x64xbf16>, vector<8x64xf32> -> vector<8x64xf32>
      %160 = vector.broadcast %73 : vector<1x64xf32> to vector<8x64xf32>
      %161 = arith.addf %159, %160 : vector<8x64xf32>
      %cst_45 = arith.constant 0.000000e+00 : f32
      %162 = vector.broadcast %cst_45 : f32 to vector<8x64xf32>
      %163 = arith.maximumf %161, %162 : vector<8x64xf32>
      %164 = arith.truncf %163 : vector<8x64xf32> to vector<8x64xbf16>
      %cst_46 = arith.constant dense<0.000000e+00> : vector<8x32xf32>
      %165 = tpu.matmul %164, %65, %cst_46 {dimension_numbers = #tpu.dot_dimension_numbers<[1], [0], [0], [1], [0, 0, 1, 1], [], []>} : vector<8x64xbf16>, vector<64x32xbf16>, vector<8x32xf32> -> vector<8x32xf32>
      %166 = vector.broadcast %74 : vector<1x32xf32> to vector<8x32xf32>
      %167 = arith.addf %165, %166 : vector<8x32xf32>
      %168 = arith.addf %157, %167 : vector<8x32xf32>
      %cst_47 = arith.constant dense<0.000000e+00> : vector<8xf32>
      %169 = vector.multi_reduction <add>, %168, %cst_47 [1] : vector<8x32xf32> to vector<8xf32>
      %170 = vector.shape_cast %169 : vector<8xf32> to vector<8x1xf32>
      %cst_48 = arith.constant 3.200000e+01 : f32
      %171 = vector.broadcast %cst_48 : f32 to vector<8x1xf32>
      %172 = arith.divf %170, %171 : vector<8x1xf32>
      %173 = vector.broadcast %172 : vector<8x1xf32> to vector<8x32xf32>
      %174 = arith.subf %168, %173 : vector<8x32xf32>
      %175 = arith.mulf %174, %174 : vector<8x32xf32>
      %cst_49 = arith.constant dense<0.000000e+00> : vector<8xf32>
      %176 = vector.multi_reduction <add>, %175, %cst_49 [1] : vector<8x32xf32> to vector<8xf32>
      %177 = vector.shape_cast %176 : vector<8xf32> to vector<8x1xf32>
      %cst_50 = arith.constant 3.200000e+01 : f32
      %178 = vector.broadcast %cst_50 : f32 to vector<8x1xf32>
      %179 = arith.divf %177, %178 : vector<8x1xf32>
      %cst_51 = arith.constant 9.99999974E-6 : f32
      %180 = vector.broadcast %cst_51 : f32 to vector<8x1xf32>
      %181 = arith.addf %179, %180 : vector<8x1xf32>
      %182 = math.rsqrt %181 : vector<8x1xf32>
      %183 = vector.broadcast %182 : vector<8x1xf32> to vector<8x32xf32>
      %184 = arith.mulf %174, %183 : vector<8x32xf32>
      %185 = vector.broadcast %75 : vector<1x32xf32> to vector<8x32xf32>
      %186 = arith.mulf %184, %185 : vector<8x32xf32>
      %187 = vector.broadcast %76 : vector<1x32xf32> to vector<8x32xf32>
      %188 = arith.addf %186, %187 : vector<8x32xf32>
      scf.yield %188 : vector<8x32xf32>
    }
    %c2_i32_13 = arith.constant 2 : i32
    %41 = arith.truncf %40 : vector<8x32xf32> to vector<8x32xbf16>
    %c0_14 = arith.constant 0 : index
    %c0_15 = arith.constant 0 : index
    %42 = vector.load %arg10[%c0_14, %c0_15] : memref<32x32xbf16, #tpu.memory_space<vmem>>, vector<32x32xbf16>
    %cst_16 = arith.constant dense<0.000000e+00> : vector<8x32xf32>
    %43 = tpu.matmul %41, %42, %cst_16 {dimension_numbers = #tpu.dot_dimension_numbers<[1], [0], [0], [1], [0, 0, 1, 1], [], []>} : vector<8x32xbf16>, vector<32x32xbf16>, vector<8x32xf32> -> vector<8x32xf32>
    %44 = vector.broadcast %4 : vector<1x32xf32> to vector<8x32xf32>
    %45 = arith.addf %43, %44 : vector<8x32xf32>
    %cst_17 = arith.constant 0.000000e+00 : f32
    %46 = vector.broadcast %cst_17 : f32 to vector<8x32xf32>
    %47 = arith.maximumf %45, %46 : vector<8x32xf32>
    %48 = arith.truncf %47 : vector<8x32xf32> to vector<8x32xbf16>
    %c0_18 = arith.constant 0 : index
    %c0_19 = arith.constant 0 : index
    %49 = vector.load %arg11[%c0_18, %c0_19] : memref<32x128xbf16, #tpu.memory_space<vmem>>, vector<32x128xbf16>
    %cst_20 = arith.constant dense<0.000000e+00> : vector<8x128xf32>
    %50 = tpu.matmul %48, %49, %cst_20 {dimension_numbers = #tpu.dot_dimension_numbers<[1], [0], [0], [1], [0, 0, 1, 1], [], []>} : vector<8x32xbf16>, vector<32x128xbf16>, vector<8x128xf32> -> vector<8x128xf32>
    %51 = vector.broadcast %5 : vector<1x128xf32> to vector<8x128xf32>
    %52 = arith.addf %50, %51 : vector<8x128xf32>
    %c0_21 = arith.constant 0 : index
    %c0_22 = arith.constant 0 : index
    %53 = vector.load %arg12[%c0_21, %c0_22] : memref<8x128xf32, #tpu.memory_space<vmem>>, vector<8x128xf32>
    tpu.vector_store %arg12[%c0_21, %c0_22], %52 {strides = array<i32>} : memref<8x128xf32, #tpu.memory_space<vmem>>, vector<8x128xf32>,
    return
  }
  func.func @transform_0(%arg0: i32) -> (i32, i32) {
    %c0_i32 = arith.constant 0 : i32
    %c0_i32_0 = arith.constant 0 : i32
    return %arg0, %c0_i32 : i32, i32
  }
  func.func @transform_1(%arg0: i32) -> (i32, i32) {
    %c0_i32 = arith.constant 0 : i32
    %c0_i32_0 = arith.constant 0 : i32
    %c0_i32_1 = arith.constant 0 : i32
    return %c0_i32, %c0_i32_0 : i32, i32
  }
  func.func @transform_2(%arg0: i32) -> (i32, i32) {
    %c0_i32 = arith.constant 0 : i32
    %c0_i32_0 = arith.constant 0 : i32
    %c0_i32_1 = arith.constant 0 : i32
    return %c0_i32, %c0_i32_0 : i32, i32
  }
  func.func @transform_3(%arg0: i32) -> (i32, i32) {
    %c0_i32 = arith.constant 0 : i32
    %c0_i32_0 = arith.constant 0 : i32
    %c0_i32_1 = arith.constant 0 : i32
    return %c0_i32, %c0_i32_0 : i32, i32
  }
  func.func @transform_4(%arg0: i32) -> (i32, i32, i32) {
    %c0_i32 = arith.constant 0 : i32
    %c0_i32_0 = arith.constant 0 : i32
    %c0_i32_1 = arith.constant 0 : i32
    %c0_i32_2 = arith.constant 0 : i32
    return %c0_i32, %c0_i32_0, %c0_i32_1 : i32, i32, i32
  }
  func.func @transform_5(%arg0: i32) -> (i32, i32, i32) {
    %c0_i32 = arith.constant 0 : i32
    %c0_i32_0 = arith.constant 0 : i32
    %c0_i32_1 = arith.constant 0 : i32
    %c0_i32_2 = arith.constant 0 : i32
    return %c0_i32, %c0_i32_0, %c0_i32_1 : i32, i32, i32
  }
  func.func @transform_6(%arg0: i32) -> (i32, i32, i32) {
    %c0_i32 = arith.constant 0 : i32
    %c0_i32_0 = arith.constant 0 : i32
    %c0_i32_1 = arith.constant 0 : i32
    %c0_i32_2 = arith.constant 0 : i32
    return %c0_i32, %c0_i32_0, %c0_i32_1 : i32, i32, i32
  }
  func.func @transform_7(%arg0: i32) -> (i32, i32, i32) {
    %c0_i32 = arith.constant 0 : i32
    %c0_i32_0 = arith.constant 0 : i32
    %c0_i32_1 = arith.constant 0 : i32
    %c0_i32_2 = arith.constant 0 : i32
    return %c0_i32, %c0_i32_0, %c0_i32_1 : i32, i32, i32
  }
  func.func @transform_8(%arg0: i32) -> (i32, i32, i32) {
    %c0_i32 = arith.constant 0 : i32
    %c0_i32_0 = arith.constant 0 : i32
    %c0_i32_1 = arith.constant 0 : i32
    %c0_i32_2 = arith.constant 0 : i32
    return %c0_i32, %c0_i32_0, %c0_i32_1 : i32, i32, i32
  }
  func.func @transform_9(%arg0: i32) -> (i32, i32) {
    %c0_i32 = arith.constant 0 : i32
    %c0_i32_0 = arith.constant 0 : i32
    %c0_i32_1 = arith.constant 0 : i32
    return %c0_i32, %c0_i32_0 : i32, i32
  }
  func.func @transform_10(%arg0: i32) -> (i32, i32) {
    %c0_i32 = arith.constant 0 : i32
    %c0_i32_0 = arith.constant 0 : i32
    %c0_i32_1 = arith.constant 0 : i32
    return %c0_i32, %c0_i32_0 : i32, i32
  }
  func.func @transform_11(%arg0: i32) -> (i32, i32) {
    %c0_i32 = arith.constant 0 : i32
    %c0_i32_0 = arith.constant 0 : i32
    return %arg0, %c0_i32 : i32, i32
  }
}

</mosaic_0001>

<bundles_post_ra>
// kernel: reconstruction_forward.1
= control target key start
LH: loop header
LB: loop body
LE: loop exit
PB: predicated region body
PF: predicated region fallthrough
CT: control target
= control target key end

     0   :  { %s1838_s17 = smov 0   ;;  %s2084_s0 = inlined_call_operand.vmem [shape: f32[16,4], index: 0, kind: input, shape index: {}]   ;;  %s2085_s1 = inlined_call_operand.vmem [shape: f32[8,32], index: 1, kind: input, shape index: {}]   ;;  %s2086_s2 = inlined_call_operand.vmem [shape: bf16[4,32], index: 2, kind: input, shape index: {}]   ;;  %s2087_s3 = inlined_call_operand.vmem [shape: f32[5,128], index: 3, kind: input, shape index: {}]   ;;  %s2088_s4 = inlined_call_operand.vmem [shape: bf16[2,32,96], index: 4, kind: input, shape index: {}]   ;;  %s2089_s5 = inlined_call_operand.vmem [shape: bf16[2,32,32], index: 5, kind: input, shape index: {}]   ;;  %s2090_s6 = inlined_call_operand.vmem [shape: bf16[2,32,64], index: 6, kind: input, shape index: {}]   ;;  %s2091_s7 = inlined_call_operand.vmem [shape: bf16[2,64,32], index: 7, kind: input, shape index: {}]   ;;  %s2092_s8 = inlined_call_operand.vmem [shape: f32[2,8,128], index: 8, kind: input, shape index: {}]   ;;  %s2093_s9 = inlined_call_operand.vmem [shape: bf16[32,32], index: 9, kind: input, shape index: {}]   ;;  %s2094_s10 = inlined_call_operand.vmem [shape: bf16[32,128], index: 10, kind: input, shape index: {}]   ;;  %s2095_s11 = inlined_call_operand.vmem [shape: f32[16,128], index: 11, kind: output, shape index: {}]  }
   0x1 LB: > { %s1478_s18 = sadd.s32 4294967295, %s1756_s17   ;;  %p1482_p0 = scmp.ge.s32.totalorder %s1756_s17, 1  ;;  %s1756_s17 = sphi %s1838_s17, %s21_s17  }
   0x2   : > { %p336_p1 = scmp.lt.s32.totalorder %s1756_s17, 3 }
   0x4   : > { %p337_p2 = pnand %p1482_p0, %p336_p1 }
   0x5   : > { %p374_p3 = scmp.lt.s32.totalorder (!%p337_p2), %s1478_s18, 1  ;;  %s1886_s13 = smov (!%p337_p2), 0  }
   0x6   : > { %340 = sbr.rel (%p337_p2) target bundleno = 3405 (0xd4d), region = 64 }
   0xb   : > { %v386_v0 = vld [vmem:[%s2086_s2] sm:$0x3]  ;;  %vm395_vm0 = vcmask 1041408   ;;  %v1766_v1 = vmov 0.0   ;;  %vm1767_vm1 = vmmov 0   ;;  %s2098_s18 = smov (!%p374_p3, %s1478_s18), 1  ;;  %v387_v5 = vlaneseq }
   0xc   : > { %1564 = vmatprep.subr.bf16.mxu0 %v1766_v1  ;;  %v397_v2 = vsel %vm395_vm0, %v386_v0, 0  ;;  %1566 = vmatprep.mubr.msk.bf16.mxu0 %vm1767_vm1, %v1766_v1  ;;  %s1483_s21 = sshll.u32 %s2098_s18, 3  ;;  %vm391_vm2 = vcmask 31744   ;;  %v1866_v8 = vld [vmem:[%s2087_s3] sm:$0x1f]  ;;  %vm442_vm3 = vcmask 261120  }
   0xd   : > { %1565 = vmatpush3.bf16.msra.mxu0 %v397_v2  ;;  %s377_s24 = scalar_lea.vmem %s2084_s0, %s1483_s21  ;;  %s1858_s27 = scalar_lea.vmem %s2095_s11, %s1483_s21  ;;  %v1860_v6 = vshrl.u32 %v387_v5, 7  ;;  %v440_v13 = vld [vmem:[%s2085_s1] sm:$0xff] }
   0xe   : > { %v384_v3 = vld [vmem:[%s377_s24] sm:$0xff] }
   0xf   : > { %v385_v4 = vpack.c.bf16 %v384_v3, %v384_v3  ;;  %v389_v7 = vsub.s32 0, %v1860_v6  ;;  %v459_v27 = vsub.s32 1, %v1860_v6  ;;  %v464_v28 = vsub.s32 2, %v1860_v6 }
  0x11   : > { %1567 = vmatmul.mubr.msk.bf16.vlgmr.msra.gmra.mxu0 %vm391_vm2, %v385_v4  ;;  %v390_v9 = vrot.slane %v1866_v8, %v389_v7  ;;  %v460_v29 = vrot.slane %v1866_v8, %v459_v27  ;;  %v465_v31 = vrot.slane %v1866_v8, %v464_v28 }
  0xd1   : > { %v433_v10 = vpop.f32.mrf.mxu0 }
  0xd2   : > { %v434_v11 = vadd.f32 %v433_v10, %v390_v9 }
  0xd3   : > { %v1568_v12 = vpop.f32.mrf.mxu0 }
  0xd4   : > { %v439_v14 = vmax.f32 %v434_v11, 0.0 }
  0xd5   : > { %v436_v15 = vpop.f32.mrf.mxu0 }
  0xd6   : > { %v441_v16 = vadd.f32 %v440_v13, %v439_v14 }
  0xd7   : > { %v1569_v17 = vpop.f32.mrf.mxu0 }
  0xd8   : > { %v443_v18 = vsel %vm442_vm3, %v441_v16, 0.0 }
  0xd9   : > { %444 = vadd.xlane.f32.xlu0 %v443_v18 }
 0x162   : > { %v445_v19 = vpop.xlane.xlu0 %444 }
 0x163   : > { %v447_v20 = vmul.f32 0.03125, %v445_v19 }
 0x165   : > { %v448_v21 = vsub.f32 %v441_v16, %v447_v20 }
 0x167   : > { %v449_v22 = vmul.f32 %v448_v21, %v448_v21 }
 0x169   : > { %v450_v23 = vsel %vm442_vm3, %v449_v22, 0.0 }
 0x16a   : > { %451 = vadd.xlane.f32.xlu0 %v450_v23 }
 0x1f3   : > { %v452_v24 = vpop.xlane.xlu0 %451 }
 0x1f4   : > { %v453_v25 = vmul.f32 0.03125, %v452_v24 }
 0x1f6   : > { %v454_v26 = vadd.f32 1e-05, %v453_v25 }
 0x1f8   : > { %1706 = vrsqrt.f32 %v454_v26 }
 0x205   : > { %v1707_v30 = vpop.eup %1706 }
 0x206   : > { %v456_v32 = vmul.f32 %v1707_v30, %v448_v21 }
 0x208   : > { %v461_v33 = vmul.f32 %v460_v29, %v456_v32 }
 0x20a   : > { %v466_v34 = vadd.f32 %v465_v31, %v461_v33  }
 0x20b LB: >> { %v1768_v35 = vmov 0.0   ;;  %vm1769_vm4 = vmmov 0   ;;  %s1522_s14 = sshll.u32 %s1764_s13, 4  ;;  %s1525_s22 = sshll.u32 %s1764_s13, 5  ;;  %v506_v38 = vpack.c.bf16 %v1760_v34, %v1760_v34  ;;  %vm583_vm5 = vcmask 64512   ;;  %s1764_s13 = sphi %s1886_s13, %s472_s13   ;;  %v1760_v34 = vphi %v466_v34, %v2096_v34  }
 0x20c   : >> { %1570 = vmatprep.subr.bf16.mxu0 %v1768_v35  ;;  %1574 = vmatprep.mubr.msk.bf16.mxu0 %vm1769_vm4, %v1768_v35  ;;  %s476_s18 = scalar_lea.vmem %s2088_s4, %s1522_s14  ;;  %s1907_s21 = scalar_lea.vmem %s2089_s5, %s1522_s14  ;;  %vm830_vm6 = vcmask 1043456   ;;  %vm1031_vm7 = vcmask 130048   ;;  %vm1033_vm8 = vcmask 195584   ;;  %vm1209_vm9 = vcmask 523264  }
 0x20d   : >> { %1578 = vmatprep.subr.bf16.mxu1 %v1768_v35  ;;  %1580 = vmatprep.mubr.msk.bf16.mxu1 %vm1769_vm4, %v1768_v35  ;;  %v1708_v36 = vld [vmem:[%s476_s18 + $0x8] sm:$0xff]   ;;  %s1913_s25 = scalar_lea.vmem %s2090_s6, %s1522_s14  ;;  %v1709_v37 = vld [vmem:[%s476_s18] sm:$0xff]   ;;  %s1919_s29 = scalar_lea.vmem %s2091_s7, %s1525_s22 }
 0x20e   : >> { %1571 = vmatpush3.bf16.msra.mxu0 %v1708_v36  ;;  %s1490_s30 = sshll.u32 %s1764_s13, 3  ;;  %s1770_s16 = smov 104  }
 0x20f   : >> { %1572 = vmatprep.subr.bf16.mxu0 %v1768_v35  ;;  %s504_s15 = scalar_lea.vmem %s2092_s8, %s1490_s30  ;;  %s1771_s18 = smov 120  }
 0x210   : >> { %v1931_v39 = vld [vmem:[%s504_s15] sm:$0xff]  ;;  %s1772_s19 = smov 112   ;;  %s1773_s20 = smov 96  }
 0x211   : >> { %v510_v40 = vrot.slane %v1931_v39, %v389_v7  ;;  %s1774_s22 = smov 64   ;;  %s1775_s23 = smov 8  }
 0x212   : >> { %1573 = vmatpush3.bf16.msra.mxu0 %v1709_v37  ;;  %s1776_s24 = smov 16   ;;  %s1777_s26 = smov 24  }
 0x213   : >> { %1584 = vmatprep.subr.bf16.mxu0 %v1768_v35  ;;  %s472_s13 = sadd.s32 1, %s1764_s13  }
 0x214   : >> { %p469_p4 = scmp.ge.s32.totalorder %s472_s13, 2  }
 0x215   : >> { %1575 = vmatmul.mubr.msk.bf16.vlgmr.msra.gmra.mxu0 %vm442_vm3, %v506_v38 }
 0x216   : >> { %1586 = vmatprep.mubr.msk.bf16.mxu0 %vm1769_vm4, %v1768_v35 }
 0x2d5   : >> { %v560_v41 = vpop.f32.mrf.mxu0 }
 0x2d6   : >> { %v561_v42 = vadd.f32 %v560_v41, %v510_v40 }
 0x2d7   : >> { %v1576_v43 = vpop.f32.mrf.mxu0 }
 0x2d8   : >> { %573 = vrot.lane.b32.xlu1 %v561_v42, %s1770_s16  ;;  %567 = vrot.lane.b32.xlu0 %v561_v42, %s1771_s18  ;;  %v1936_v45 = vpack.c.bf16 %v561_v42, %v561_v42 }
 0x2d9   : >> { %v563_v44 = vpop.f32.mrf.mxu0 }
 0x2db   : >> { %v1577_v46 = vpop.f32.mrf.mxu0 }
 0x2dc   : >> { %570 = vrot.lane.b32.xlu0 %v561_v42, %s1772_s19  ;;  %581 = vrot.lane.b32.xlu1 %v1936_v45, %s1773_s20 }
 0x34a   : >> { %v574_v47 = vpop.permute.xlu1 %573  ;;  %v568_v48 = vpop.permute.xlu0 %567 }
 0x34b   : >> { %v577_v49 = vpack.c.bf16 %v568_v48, %v568_v48  ;;  %v1939_v52 = vpack.c.bf16 %v574_v47, %v574_v47 }
 0x34d   : >> { %631 = vrot.lane.b32.xlu0 %v577_v49, %s1773_s20 }
 0x34e   : >> { %v571_v50 = vpop.permute.xlu0 %570  ;;  %v582_v51 = vpop.permute.xlu1 %581 }
 0x34f   : >> { %v1941_v53 = vpack.c.bf16 %v571_v50, %v571_v50  ;;  %v588_v54 = vsel %vm583_vm5, %v582_v51, 0 }
 0x350   : >> { %1579 = vmatpush3.bf16.xpose.msra.mxu1 %v588_v54 }
 0x351   : >> { %729 = vrot.lane.b32.xlu0 %v1939_v52, %s1773_s20  ;;  %680 = vrot.lane.b32.xlu1 %v1941_v53, %s1773_s20 }
 0x352   : >> { %1590 = vmatprep.subr.bf16.mxu1 %v1768_v35 }
 0x357   : >> { %1581 = vmatmul.mubr.msk.bf16.vlgmr.msra.gmra.mxu1 %vm583_vm5, %v1936_v45 }
 0x358   : >> { %1592 = vmatprep.mubr.msk.bf16.mxu1 %vm1769_vm4, %v1768_v35 }
 0x3bf   : >> { %v632_v55 = vpop.permute.xlu0 %631 }
 0x3c0   : >> { %v637_v56 = vsel %vm583_vm5, %v632_v55, 0 }
 0x3c1   : >> { %1585 = vmatpush3.bf16.xpose.msra.mxu0 %v637_v56 }
 0x3c2   : >> { %1596 = vmatprep.subr.bf16.mxu0 %v1768_v35 }
 0x3c3   : >> { %v681_v57 = vpop.permute.xlu1 %680  ;;  %v730_v59 = vpop.permute.xlu0 %729 }
 0x3c4   : >> { %v686_v58 = vsel %vm583_vm5, %v681_v57, 0  ;;  %v735_v60 = vsel %vm583_vm5, %v730_v59, 0 }
 0x3c5   : >> { %1591 = vmatpush3.bf16.xpose.msra.mxu1 %v686_v58 }
 0x3c6   : >> { %1602 = vmatprep.subr.bf16.mxu1 %v1768_v35 }
 0x3c8   : >> { %1587 = vmatmul.mubr.msk.bf16.vlgmr.msra.gmra.mxu0 %vm583_vm5, %v577_v49 }
 0x3c9   : >> { %1597 = vmatpush3.bf16.xpose.msra.mxu0 %v735_v60  ;;  %1598 = vmatprep.mubr.msk.bf16.mxu0 %vm1769_vm4, %v1768_v35 }
 0x3ca   : >> { %1608 = vmatprep.subr.bf16.mxu0 %v1768_v35 }
 0x3cc   : >> { %1593 = vmatmul.mubr.msk.bf16.vlgmr.msra.gmra.mxu1 %vm583_vm5, %v1941_v53 }
 0x3cd   : >> { %1604 = vmatprep.mubr.msk.bf16.mxu1 %vm1769_vm4, %v1768_v35 }
 0x3d0   : >> { %1599 = vmatmul.mubr.msk.bf16.vlgmr.msra.gmra.mxu0 %vm583_vm5, %v1939_v52 }
 0x3d1   : >> { %1610 = vmatprep.mubr.msk.bf16.mxu0 %vm1769_vm4, %v1768_v35 }
 0x417   : >> { %v624_v61 = vpop.f32.mrf.mxu1 }
 0x418   : >> { %v777_v62 = vsel %vm583_vm5, %v624_v61, -inf }
 0x419   : >> { %778 = vmax.xlane.f32.xlu1 %v777_v62  ;;  %v1582_v63 = vpop.f32.mrf.mxu1 }
 0x41b   : >> { %v627_v0 = vpop.f32.mrf.mxu1 }
 0x41d   : >> { %v1583_v2 = vpop.f32.mrf.mxu1 }
 0x488   : >> { %v673_v3 = vpop.f32.mrf.mxu0 }
 0x489   : >> { %v780_v4 = vsel %vm583_vm5, %v673_v3, -inf }
 0x48a   : >> { %781 = vmax.xlane.f32.xlu0 %v780_v4  ;;  %v1588_v5 = vpop.f32.mrf.mxu0 }
 0x48c   : >> { %v676_v9 = vpop.f32.mrf.mxu0  ;;  %v722_v10 = vpop.f32.mrf.mxu1 }
 0x48d   : >> { %v783_v11 = vsel %vm583_vm5, %v722_v10, -inf }
 0x48e   : >> { %v1594_v12 = vpop.f32.mrf.mxu1  ;;  %784 = vmax.xlane.f32.xlu0 %v783_v11  ;;  %v1589_v13 = vpop.f32.mrf.mxu0 }
 0x490   : >> { %v725_v14 = vpop.f32.mrf.mxu1  ;;  %v771_v15 = vpop.f32.mrf.mxu0 }
 0x491   : >> { %v786_v16 = vsel %vm583_vm5, %v771_v15, -inf  ;;  %v1710_v14 = vld [vmem:[%s1907_s21 + $0x8] sm:$0xff]  }
 0x492   : >> { %v1595_v17 = vpop.f32.mrf.mxu1  ;;  %787 = vmax.xlane.f32.xlu1 %v786_v16  ;;  %v1600_v18 = vpop.f32.mrf.mxu0 }
 0x494   : >> { %v774_v19 = vpop.f32.mrf.mxu0 }
 0x496   : >> { %v1601_v20 = vpop.f32.mrf.mxu0 }
 0x4a2   : >> { %v779_v21 = vpop.xlane.xlu1 %778 }
 0x4a3   : >> { %874 = vrot.lane.b32.xlu1 %v577_v49, %s1774_s22  ;;  %v789_v22 = vsub.f32 %v624_v61, %v779_v21 }
 0x4a4   : >> { %825 = vrot.lane.b32.xlu0 %v1936_v45, %s1774_s22 }
 0x4a5   : >> { %v793_v23 = vmul.f32 1.442695, %v789_v22 }
 0x4a7   : >> { %1718 = vpow2.f32 %v793_v23 }
 0x4b4   : >> { %v1719_v24 = vpop.eup %1718 }
 0x4b5   : >> { %v801_v25 = vsel %vm583_vm5, %v1719_v24, 0.0 }
 0x4c3   : >> { %802 = vadd.xlane.f32.xlu0 %v801_v25 }
 0x513   : >> { %v782_v26 = vpop.xlane.xlu0 %781 }
 0x514   : >> { %v790_v29 = vsub.f32 %v673_v3, %v782_v26 }
 0x516   : >> { %v795_v30 = vmul.f32 1.442695, %v790_v29 }
 0x517   : >> { %v785_v31 = vpop.xlane.xlu0 %784 }
 0x518   : >> { %1720 = vpow2.f32 %v795_v30  ;;  %v791_v32 = vsub.f32 %v722_v10, %v785_v31 }
 0x51a   : >> { %v797_v33 = vmul.f32 1.442695, %v791_v32 }
 0x51b   : >> { %v826_v36 = vpop.permute.xlu0 %825  ;;  %v788_v37 = vpop.xlane.xlu1 %787 }
 0x51c   : >> { %1722 = vpow2.f32 %v797_v33  ;;  %v832_v38 = vsel %vm830_vm6, %v826_v36, 0  ;;  %v792_v40 = vsub.f32 %v771_v15, %v788_v37  ;;  %v1711_v15 = vld [vmem:[%s1907_s21] sm:$0xff]  }
 0x51d   : >> { %1603 = vmatpush3.bf16.msra.mxu1 %v832_v38 }
 0x51e   : >> { %v799_v41 = vmul.f32 1.442695, %v792_v40  ;;  %1614 = vmatprep.subr.bf16.mxu1 %v1768_v35  ;;  %v1039_v40 = vrot.slane %v1931_v39, %v459_v27  ;;  %v1740_v27 = vld [vmem:[%s2094_s10 + $0x8] sm:$0xff] (%p469_p4)  }
 0x51f   : >> { %v875_v42 = vpop.permute.xlu1 %874 }
 0x520   : >> { %1724 = vpow2.f32 %v799_v41  ;;  %v880_v43 = vsel %vm830_vm6, %v875_v42, 0 }
 0x521   : >> { %1609 = vmatpush3.bf16.msra.mxu0 %v880_v43 }
 0x522   : >> { %1620 = vmatprep.subr.bf16.mxu0 %v1768_v35 }
 0x525   : >> { %v1721_v44 = vpop.eup %1720 }
 0x526   : >> { %v804_v45 = vsel %vm583_vm5, %v1721_v44, 0.0 }
 0x527   : >> { %805 = vadd.xlane.f32.xlu1 %v804_v45 }
 0x529   : >> { %v1723_v46 = vpop.eup %1722 }
 0x52a   : >> { %v807_v47 = vsel %vm583_vm5, %v1723_v46, 0.0 }
 0x52b   : >> { %808 = vadd.xlane.f32.xlu0 %v807_v47 }
 0x52d   : >> { %v1725_v48 = vpop.eup %1724 }
 0x52e   : >> { %v810_v49 = vsel %vm583_vm5, %v1725_v48, 0.0 }
 0x52f   : >> { %811 = vadd.xlane.f32.xlu1 %v810_v49 }
 0x540   : >> { %922 = vrot.lane.b32.xlu1 %v1941_v53, %s1774_s22 }
 0x541   : >> { %970 = vrot.lane.b32.xlu0 %v1939_v52, %s1774_s22 }
 0x54c   : >> { %v803_v50 = vpop.xlane.xlu0 %802 }
 0x54d   : >> { %1726 = vrcp.f32 %v803_v50 }
 0x55a   : >> { %v1727_v51 = vpop.eup %1726 }
 0x55b   : >> { %v817_v54 = vmul.f32 %v1727_v51, %v1719_v24 }
 0x55d   : >> { %v821_v55 = vpack.c.bf16 %v817_v54, %v817_v54 }
 0x55f   : >> { %1605 = vmatmul.mubr.msk.bf16.vlgmr.msra.gmra.mxu1 %vm583_vm5, %v821_v55  ;;  %v1712_v55 = vld [vmem:[%s1913_s25 + $0x8] sm:$0xff]  }
 0x560   : >> { %1616 = vmatprep.mubr.msk.bf16.mxu1 %vm1769_vm4, %v1768_v35 }
 0x5b0   : >> { %v806_v56 = vpop.xlane.xlu1 %805 }
 0x5b1   : >> { %1728 = vrcp.f32 %v806_v56  ;;  %v1713_v56 = vld [vmem:[%s1913_s25] sm:$0xff]  }
 0x5b4   : >> { %v809_v57 = vpop.xlane.xlu0 %808 }
 0x5b5   : >> { %1730 = vrcp.f32 %v809_v57  ;;  %v1715_v57 = vld [vmem:[%s1919_s29 + $0x10] sm:$0xff]  }
 0x5b8   : >> { %v812_v58 = vpop.xlane.xlu1 %811  ;;  %v971_v61 = vpop.permute.xlu0 %970 }
 0x5b9   : >> { %1732 = vrcp.f32 %v812_v58  ;;  %v976_v0 = vsel %vm830_vm6, %v971_v61, 0 }
 0x5bc   : >> { %v923_v53 = vpop.permute.xlu1 %922 }
 0x5bd   : >> { %v928_v59 = vsel %vm830_vm6, %v923_v53, 0 }
 0x5be   : >> { %v1729_v52 = vpop.eup %1728  ;;  %1615 = vmatpush3.bf16.msra.mxu1 %v928_v59 }
 0x5bf   : >> { %v818_v60 = vmul.f32 %v1729_v52, %v1721_v44  ;;  %1626 = vmatprep.subr.bf16.mxu1 %v1768_v35  ;;  %v1116_v52 = vsub.s32 3, %v1860_v6 }
 0x5c1   : >> { %v822_v62 = vpack.c.bf16 %v818_v60, %v818_v60  ;;  %v1112_v60 = vrot.slane %v1931_v39, %v464_v28  ;;  %v1741_v28 = vld [vmem:[%s2094_s10] sm:$0xff] (%p469_p4)  }
 0x5c2   : >> { %v1731_v63 = vpop.eup %1730 }
 0x5c3   : >> { %1611 = vmatmul.mubr.msk.bf16.vlgmr.msra.gmra.mxu0 %vm583_vm5, %v822_v62  ;;  %v819_v2 = vmul.f32 %v1731_v63, %v1723_v46  ;;  %v1117_v63 = vrot.slane %v1931_v39, %v1116_v52 }
 0x5c4   : >> { %1621 = vmatpush3.bf16.msra.mxu0 %v976_v0  ;;  %1622 = vmatprep.mubr.msk.bf16.mxu0 %vm1769_vm4, %v1768_v35 }
 0x5c5   : >> { %v823_v3 = vpack.c.bf16 %v819_v2, %v819_v2  ;;  %1634 = vmatprep.subr.bf16.mxu0 %v1768_v35 }
 0x5c6   : >> { %v1733_v4 = vpop.eup %1732 }
 0x5c7   : >> { %1617 = vmatmul.mubr.msk.bf16.vlgmr.msra.gmra.mxu1 %vm583_vm5, %v823_v3  ;;  %v820_v5 = vmul.f32 %v1733_v4, %v1725_v48  ;;  %v1716_v4 = vld [vmem:[%s1919_s29 + $0x8] sm:$0xff]  }
 0x5c8   : >> { %1630 = vmatprep.mubr.msk.bf16.mxu1 %vm1769_vm4, %v1768_v35  ;;  %1627 = vmatpush3.bf16.msra.mxu1 %v1710_v14 }
 0x5c9   : >> { %v824_v9 = vpack.c.bf16 %v820_v5, %v820_v5  ;;  %1628 = vmatprep.subr.bf16.mxu1 %v1768_v35  ;;  %v1717_v5 = vld [vmem:[%s1919_s29] sm:$0xff]  }
 0x5cb   : >> { %1623 = vmatmul.mubr.msk.bf16.vlgmr.msra.gmra.mxu0 %vm583_vm5, %v824_v9  ;;  %v1122_v9 = vsub.s32 4, %v1860_v6 }
 0x5cc   : >> { %1638 = vmatprep.mubr.msk.bf16.mxu0 %vm1769_vm4, %v1768_v35  ;;  %1629 = vmatpush3.bf16.msra.mxu1 %v1711_v15 }
 0x5cd   : >> { %1642 = vmatprep.subr.bf16.mxu1 %v1768_v35  ;;  %1635 = vmatpush3.bf16.msra.mxu0 %v1712_v55 }
 0x5ce   : >> { %1636 = vmatprep.subr.bf16.mxu0 %v1768_v35 }
 0x5d1   : >> { %1637 = vmatpush3.bf16.msra.mxu0 %v1713_v56 }
 0x5d2   : > { %1654 = vmatprep.subr.bf16.mxu0 (%p469_p4), %v1766_v1 }
 0x61f   : >> { %v868_v10 = vpop.f32.mrf.mxu1 }
 0x621   : >> { %v1606_v11 = vpop.f32.mrf.mxu1 }
 0x623   : >> { %v871_v12 = vpop.f32.mrf.mxu1 }
 0x625   : >> { %v1607_v13 = vpop.f32.mrf.mxu1 }
 0x683   : >> { %v916_v16 = vpop.f32.mrf.mxu0 }
 0x684   : >> { %1019 = vrot.lane.b32.xlu1 %v916_v16, %s1775_s23 }
 0x685   : >> { %v1612_v17 = vpop.f32.mrf.mxu0 }
 0x687   : >> { %v919_v18 = vpop.f32.mrf.mxu0  ;;  %v964_v19 = vpop.f32.mrf.mxu1 }
 0x688   : >> { %1023 = vrot.lane.b32.xlu0 %v964_v19, %s1776_s24  ;;  %v1183_v18 = vsub.s32 5, %v1860_v6 }
 0x689   : >> { %v1613_v20 = vpop.f32.mrf.mxu0  ;;  %v1618_v21 = vpop.f32.mrf.mxu1 }
 0x68b   : >> { %v967_v22 = vpop.f32.mrf.mxu1  ;;  %v1012_v23 = vpop.f32.mrf.mxu0 }
 0x68c   : >> { %1027 = vrot.lane.b32.xlu1 %v1012_v23, %s1777_s26 }
 0x68d   : >> { %v1619_v24 = vpop.f32.mrf.mxu1  ;;  %v1624_v25 = vpop.f32.mrf.mxu0 }
 0x68f   : >> { %v1015_v26 = vpop.f32.mrf.mxu0 }
 0x691   : >> { %v1625_v29 = vpop.f32.mrf.mxu0 }
 0x6f6   : >> { %v1020_v30 = vpop.permute.xlu1 %1019 }
 0x6f7   : >> { %v1030_v32 = vsel %vm583_vm5, %v868_v10, %v1020_v30  ;;  %v1123_v10 = vrot.slane %v1931_v39, %v1122_v9 }
 0x6fa   : >> { %v1024_v31 = vpop.permute.xlu0 %1023 }
 0x6fb   : >> { %v1032_v33 = vsel %vm1031_vm7, %v1030_v32, %v1024_v31 }
 0x6fe   : >> { %v1028_v36 = vpop.permute.xlu1 %1027 }
 0x6ff   : >> { %v1034_v37 = vsel %vm1033_vm8, %v1032_v33, %v1028_v36 }
 0x700   : >> { %v1035_v38 = vpack.c.bf16 %v1034_v37, %v1034_v37 }
 0x702   : >> { %1631 = vmatmul.mubr.msk.bf16.vlgmr.msra.gmra.mxu1 %vm442_vm3, %v1035_v38  ;;  %v1269_v38 = vsub.s32 6, %v1860_v6 }
 0x703   : >> { %1650 = vmatprep.mubr.msk.bf16.mxu1 %vm1769_vm4, %v1768_v35 }
 0x7c2   : >> { %v1089_v41 = vpop.f32.mrf.mxu1 }
 0x7c3   : >> { %v1090_v42 = vadd.f32 %v1089_v41, %v1039_v40  ;;  %v1274_v40 = vsub.s32 7, %v1860_v6  ;;  %v1270_v41 = vrot.slane %v1931_v39, %v1269_v38 }
 0x7c4   : >> { %v1632_v43 = vpop.f32.mrf.mxu1 }
 0x7c5   : >> { %v1095_v44 = vadd.f32 %v1760_v34, %v1090_v42  ;;  %v1714_v34 = vld [vmem:[%s1919_s29 + $0x18] sm:$0xff]   ;;  %v1275_v43 = vrot.slane %v1931_v39, %v1274_v40 }
 0x7c6   : >> { %v1092_v45 = vpop.f32.mrf.mxu1  ;;  %1643 = vmatpush3.bf16.msra.mxu1 %v1714_v34 }
 0x7c7   : >> { %v1096_v46 = vsel %vm442_vm3, %v1095_v44, 0.0  ;;  %1644 = vmatprep.subr.bf16.mxu1 %v1768_v35 }
 0x7c8   : >> { %1097 = vadd.xlane.f32.xlu0 %v1096_v46  ;;  %v1633_v47 = vpop.f32.mrf.mxu1 }
 0x7c9   : > { %v1738_v47 = vld [vmem:[%s2093_s9 + $0x8] sm:$0xff] (%p469_p4)  }
 0x7ca   : >> { %1645 = vmatpush3.bf16.msra.mxu1 %v1715_v57 }
 0x7cb   : >> { %1646 = vmatprep.subr.bf16.mxu1 %v1768_v35 }
 0x7ce   : >> { %1647 = vmatpush3.bf16.msra.mxu1 %v1716_v4 }
 0x7cf   : >> { %1648 = vmatprep.subr.bf16.mxu1 %v1768_v35  ;;  %v1184_v35 = vrot.slane %v1931_v39, %v1183_v18  ;;  %v1739_v39 = vld [vmem:[%s2093_s9] sm:$0xff] (%p469_p4)  }
 0x7d2   : >> { %1649 = vmatpush3.bf16.msra.mxu1 %v1717_v5 }
 0x7d3   : > { %1662 = vmatprep.subr.bf16.mxu1 (%p469_p4), %v1766_v1 }
 0x851   : >> { %v1098_v48 = vpop.xlane.xlu0 %1097 }
 0x852   : >> { %v1099_v49 = vmul.f32 0.03125, %v1098_v48  ;;  %v1285_v48 = vrot.slane (%p469_p4), %v1866_v8, %v1116_v52 }
 0x854   : >> { %v1100_v50 = vsub.f32 %v1095_v44, %v1099_v49 }
 0x856   : >> { %v1101_v51 = vmul.f32 %v1100_v50, %v1100_v50 }
 0x858   : >> { %v1102_v54 = vsel %vm442_vm3, %v1101_v51, 0.0 }
 0x859   : >> { %1103 = vadd.xlane.f32.xlu1 %v1102_v54 }
 0x8e2   : >> { %v1104_v58 = vpop.xlane.xlu1 %1103 }
 0x8e3   : >> { %v1105_v53 = vmul.f32 0.03125, %v1104_v58 }
 0x8e5   : >> { %v1106_v59 = vadd.f32 1e-05, %v1105_v53 }
 0x8e7   : >> { %1734 = vrsqrt.f32 %v1106_v59 }
 0x8f4   : >> { %v1735_v61 = vpop.eup %1734 }
 0x8f5   : >> { %v1108_v62 = vmul.f32 %v1735_v61, %v1100_v50 }
 0x8f7   : >> { %v1113_v0 = vmul.f32 %v1112_v60, %v1108_v62 }
 0x8f9   : >> { %v1118_v2 = vadd.f32 %v1117_v63, %v1113_v0 }
 0x8fb   : >> { %v1119_v3 = vpack.c.bf16 %v1118_v2, %v1118_v2 }
 0x8fd   : >> { %1639 = vmatmul.mubr.msk.bf16.vlgmr.msra.gmra.mxu0 %vm442_vm3, %v1119_v3 }
 0x8fe   : > { %1658 = vmatprep.mubr.msk.bf16.mxu0 (%p469_p4), %vm1767_vm1, %v1766_v1  ;;  %1655 = vmatpush3.bf16.msra.mxu0 (%p469_p4), %v1738_v47 }
 0x8ff   : > { %1656 = vmatprep.subr.bf16.mxu0 (%p469_p4), %v1766_v1 }
 0x902   : > { %1657 = vmatpush3.bf16.msra.mxu0 (%p469_p4), %v1739_v39 }
 0x9bd   : >> { %v1173_v11 = vpop.f32.mrf.mxu0 }
 0x9be   : >> { %v1174_v12 = vadd.f32 %v1173_v11, %v1123_v10 }
 0x9bf   : >> { %v1640_v13 = vpop.f32.mrf.mxu0 }
 0x9c0   : >> { %v1179_v14 = vmax.f32 %v1174_v12, 0.0 }
 0x9c1   : >> { %v1176_v15 = vpop.f32.mrf.mxu0 }
 0x9c2   : >> { %v1180_v16 = vpack.c.bf16 %v1179_v14, %v1179_v14 }
 0x9c3   : >> { %v1641_v17 = vpop.f32.mrf.mxu0 }
 0x9c4   : >> { %1651 = vmatmul.mubr.msk.bf16.vlgmr.msra.gmra.mxu1 %vm1209_vm9, %v1180_v16 }
 0x9c5   : > { %1666 = vmatprep.mubr.msk.bf16.mxu1 (%p469_p4), %vm1767_vm1, %v1766_v1  ;;  %1663 = vmatpush3.bf16.msra.mxu1 (%p469_p4), %v1740_v27 }
 0x9c6   : > { %1664 = vmatprep.subr.bf16.mxu1 (%p469_p4), %v1766_v1  ;;  %v1350_v1 = vrot.slane (%p469_p4), %v1866_v8, %v1122_v9 }
 0x9c9   : > { %1665 = vmatpush3.bf16.msra.mxu1 (%p469_p4), %v1741_v28 }
 0xa84   : >> { %v1247_v19 = vpop.f32.mrf.mxu1 }
 0xa85   : >> { %v1248_v20 = vadd.f32 %v1247_v19, %v1184_v35 }
 0xa86   : >> { %v1652_v21 = vpop.f32.mrf.mxu1 }
 0xa87   : >> { %v1253_v22 = vadd.f32 %v1248_v20, %v1118_v2 }
 0xa88   : >> { %v1250_v23 = vpop.f32.mrf.mxu1 }
 0xa89   : >> { %v1254_v24 = vsel %vm442_vm3, %v1253_v22, 0.0 }
 0xa8a   : >> { %1255 = vadd.xlane.f32.xlu0 %v1254_v24  ;;  %v1653_v25 = vpop.f32.mrf.mxu1 }
 0xb13   : >> { %v1256_v26 = vpop.xlane.xlu0 %1255 }
 0xb14   : >> { %v1257_v29 = vmul.f32 0.03125, %v1256_v26 }
 0xb16   : >> { %v1258_v30 = vsub.f32 %v1253_v22, %v1257_v29 }
 0xb18   : >> { %v1259_v31 = vmul.f32 %v1258_v30, %v1258_v30 }
 0xb1a   : >> { %v1260_v32 = vsel %vm442_vm3, %v1259_v31, 0.0 }
 0xb1b   : >> { %1261 = vadd.xlane.f32.xlu0 %v1260_v32 }
 0xba4   : >> { %v1262_v33 = vpop.xlane.xlu0 %1261 }
 0xba5   : >> { %v1263_v36 = vmul.f32 0.03125, %v1262_v33 }
 0xba7   : >> { %v1264_v37 = vadd.f32 1e-05, %v1263_v36 }
 0xba9   : >> { %1736 = vrsqrt.f32 %v1264_v37 }
 0xbb6   : >> { %v1737_v42 = vpop.eup %1736 }
 0xbb7   : >> { %v1266_v44 = vmul.f32 %v1737_v42, %v1258_v30 }
 0xbb9   : >> { %v1271_v45 = vmul.f32 %v1270_v41, %v1266_v44  ;;  %471 = sbr.rel (!%p469_p4) target bundleno = 523 (0x20b), region = 106 }
 0xbbb   : >> { %v1276_v46 = vadd.f32 %v1275_v43, %v1271_v45  }
 0xbbd   : >> { %v2096_v34 = vmov %v1276_v46  ;;  %v1277_v7 = vpack.c.bf16 (%p469_p4), %v1276_v46, %v1276_v46 }
 0xbbf   : > { %1659 = vmatmul.mubr.msk.bf16.vlgmr.msra.gmra.mxu0 %vm442_vm3, %v1277_v7 }
 0xc7f   : > { %v1335_v49 = vpop.f32.mrf.mxu0 }
 0xc80   : > { %v1336_v50 = vadd.f32 %v1335_v49, %v1285_v48 }
 0xc81   : > { %v1660_v51 = vpop.f32.mrf.mxu0 }
 0xc82   : > { %v1341_v54 = vmax.f32 %v1336_v50, 0.0 }
 0xc83   : > { %v1338_v55 = vpop.f32.mrf.mxu0 }
 0xc84   : > { %v1342_v56 = vpack.c.bf16 %v1341_v54, %v1341_v54 }
 0xc85   : > { %v1661_v34 = vpop.f32.mrf.mxu0 }
 0xc86   : > { %1667 = vmatmul.mubr.msk.bf16.vlgmr.msra.gmra.mxu1 %vm442_vm3, %v1342_v56 }
 0xd46   : > { %v1400_v57 = vpop.f32.mrf.mxu1 }
 0xd47   : > { %v1401_v58 = vadd.f32 %v1400_v57, %v1350_v1 }
 0xd48   : > { %v1668_v53 = vpop.f32.mrf.mxu1 }
 0xd49   : > { %1406 = vst [vmem:[%s1858_s27] sm:$0xff] %v1401_v58 }
 0xd4a   : > { %v1403_v59 = vpop.f32.mrf.mxu1 }
 0xd4c   : > { %v1669_v60 = vpop.f32.mrf.mxu1 }
 0xd4d PF: > { %s21_s17 = sadd.s32 1, %s1756_s17  }
 0xd4e   : > { %p18_p5 = scmp.ge.s32.totalorder %s21_s17, 4  }
 0xd50   :  { %20 = sbr.rel (!%p18_p5) target bundleno = 1 (0x1), region = 117 }

</bundles_post_ra>
